<compile_context>
chip_gen: v7x
topology: tpu7x:2x2x1
jax: 0.10.0
libtpu: 0.0.40
codegen_flags: <defaults>
</compile_context>

<pallas_src>
import jax
import jax.numpy as jnp
from jax.experimental import pallas as pl
from jax.experimental.pallas import tpu as pltpu

VOCAB = 100       # indices in the reference `x` go up to 99
VOCAB_PAD = 128   # pad vocab to one lane-width for the one-hot gather matmul
EMBED = 16
HIDDEN = 32
NCLASS = 5
GATES = 4 * HIDDEN      # 128 -> exactly one lane-width
B_PAD = 8               # pad batch to a full sublane group
LANES = 128             # lane-dense output width


def lstm_fixed_len_kernel(ids_ref, embproj_ref, whh_ref, wlin_ref, blin_ref,
                          out_ref, xw_ref):
    # ids_ref:     (T*Bp, 1) int32   time-major token ids; row t*Bp + b
    # embproj_ref: (Vpad, 4H) f32    row v = emb[v] @ W_ih^T + (b_ih + b_hh)
    # whh_ref:     (4H, 4H)  bf16    rows 0:H = W_hh^T, rows H:4H = 0
    # wlin_ref:    (4H, 128) f32     rows 0:H, cols 0:5 = W_lin^T, rest 0
    # blin_ref:    (1, 128)  f32     cols 0:5 = b_lin, rest 0
    # out_ref:     (Bp, 128) f32     lane-dense; caller slices [:, :5]
    # xw_ref:      (T*Bp, 4H) f32    VMEM scratch for the input projection
    Bp = out_ref.shape[0]
    TBp = ids_ref.shape[0]
    T = TBp // Bp
    H = HIDDEN
    Vp = embproj_ref.shape[0]

    # --- Prologue: fused embedding gather + input projection + bias -------
    # one_hot(ids) @ (emb @ W_ih^T + b)  ==  emb[ids] @ W_ih^T + b
    ids = ids_ref[...]                                            # (T*Bp, 1)
    onehot = (jax.lax.broadcasted_iota(jnp.int32, (TBp, Vp), 1)
              == ids).astype(jnp.float32)                         # exact row select
    xw_ref[...] = jnp.dot(onehot, embproj_ref[...],
                          preferred_element_type=jnp.float32)     # (T*Bp, 4H)

    # Hoisted per-lane activation constants:
    #   sigmoid(x) = 0.5 * tanh(0.5 * x) + 0.5   on the i/f/o lane blocks,
    #   tanh(x)                                   on the g lane block.
    lane = jax.lax.broadcasted_iota(jnp.int32, (Bp, GATES), 1)
    is_g = (lane >= 2 * H) & (lane < 3 * H)
    a_scale = jnp.where(is_g, 1.0, 0.5).astype(jnp.float32)       # pre & post mul
    a_shift = jnp.where(is_g, 0.0, 0.5).astype(jnp.float32)

    # State lives in vregs.  Lanes 0:H are the true h/c; lanes H:4H carry
    # bounded junk (|c junk| grows ~linearly with T, harmless at T=8) that
    # never reaches real outputs: whh_ref / wlin_ref rows H:4H are zero.
    h = jnp.zeros((Bp, GATES), jnp.float32)
    c = jnp.zeros((Bp, GATES), jnp.float32)

    for t in range(T):                        # static, fully unrolled (T = 8)
        # Packed gate pre-activations in PyTorch order [i | f | g | o].
        gates = xw_ref[t * Bp:(t + 1) * Bp, :] + jnp.dot(
            h.astype(jnp.bfloat16), whh_ref[...],
            preferred_element_type=jnp.float32)                   # (Bp, 4H)
        # One EUP pass yields sigmoid(i/f/o) and tanh(g) simultaneously.
        act = jnp.tanh(gates * a_scale) * a_scale + a_shift
        # Lane-align f and g onto lanes 0:H (XLU slot, off the VPU/EUP path).
        f_al = pltpu.roll(act, shift=3 * H, axis=1)               # f -> lanes 0:H
        g_al = pltpu.roll(act, shift=2 * H, axis=1)               # g -> lanes 0:H
        c = f_al * c + act * g_al                                 # lanes 0:H = f*c + i*g
        o_al = pltpu.roll(act, shift=H, axis=1)                   # o -> lanes 0:H (after c)
        h = o_al * jnp.tanh(c)                                    # lanes 0:H = o*tanh(c)

    # Classifier on the final hidden state; lane-dense unmasked store.
    out_ref[...] = (jnp.dot(h, wlin_ref[...],
                            preferred_element_type=jnp.float32)
                    + blin_ref[...])


def init_params(key):
    ks = jax.random.split(key, 7)
    bound = 1.0 / jnp.sqrt(jnp.float32(HIDDEN))
    emb = jax.random.normal(ks[0], (VOCAB, EMBED), jnp.float32)
    emb = emb.at[0].set(0.0)  # nn.Embedding(padding_idx=0)
    w_ih = jax.random.uniform(ks[1], (GATES, EMBED), jnp.float32, -bound, bound)
    w_hh = jax.random.uniform(ks[2], (GATES, HIDDEN), jnp.float32, -bound, bound)
    b_ih = jax.random.uniform(ks[3], (GATES,), jnp.float32, -bound, bound)
    b_hh = jax.random.uniform(ks[4], (GATES,), jnp.float32, -bound, bound)
    w_lin = jax.random.uniform(ks[5], (NCLASS, HIDDEN), jnp.float32, -bound, bound)
    b_lin = jax.random.uniform(ks[6], (NCLASS,), jnp.float32, -bound, bound)
    raw = dict(emb=emb, w_ih=w_ih, w_hh=w_hh, b_ih=b_ih, b_hh=b_hh,
               w_lin=w_lin, b_lin=b_lin)

    # Kernel-side packed weights.  NOTE: the junk-lane scheme is only correct
    # because rows H:4H of whh_big / wlin_big are exactly zero -- preserve
    # this zero padding when importing real checkpoints.
    emb_proj = emb @ w_ih.T + (b_ih + b_hh)                       # (VOCAB, 4H)
    emb_proj_pad = jnp.zeros((VOCAB_PAD, GATES), jnp.float32).at[:VOCAB].set(emb_proj)
    whh_big = jnp.zeros((GATES, GATES), jnp.float32).at[:HIDDEN, :].set(w_hh.T)
    wlin_big = jnp.zeros((GATES, LANES), jnp.float32).at[:HIDDEN, :NCLASS].set(w_lin.T)
    blin_pad = jnp.zeros((1, LANES), jnp.float32).at[0, :NCLASS].set(b_lin)
    packed = dict(
        emb_proj=emb_proj_pad,                   # (128, 4H) f32, rows VOCAB: zero
        w_hh=whh_big.astype(jnp.bfloat16),       # (4H, 4H) bf16, rows H:4H zero
        w_lin=wlin_big,                          # (4H, 128) f32, mostly zero
        b_lin=blin_pad,                          # (1, 128) f32
    )
    return raw, packed


@jax.jit
def lstm_fixed_len_forward(x_idx, l, packed):
    del l  # lengths are unused by LSTM_fixed_len.forward
    B, T = x_idx.shape
    # Pad batch to a full sublane group; token 0 embeds to the zero row.
    x_pad = jnp.zeros((B_PAD, T), x_idx.dtype).at[:B].set(x_idx)
    ids_tm = x_pad.T.reshape(T * B_PAD, 1)       # row t*B_PAD + b == token (b, t)
    # nn.Dropout(0.2) is identity at inference time.
    # TODO(synk): training-mode dropout masking not implemented (inference semantics).

    out = pl.pallas_call(
        lstm_fixed_len_kernel,
        out_shape=jax.ShapeDtypeStruct((B_PAD, LANES), jnp.float32),
        in_specs=[pl.BlockSpec(memory_space=pltpu.MemorySpace.VMEM)] * 5,
        out_specs=pl.BlockSpec(memory_space=pltpu.MemorySpace.VMEM),
        scratch_shapes=[pltpu.VMEM((T * B_PAD, GATES), jnp.float32)],
    )(ids_tm, packed["emb_proj"], packed["w_hh"],
      packed["w_lin"], packed["b_lin"])
    return out[:B, :NCLASS]


def lstm_fixed_len_reference(x_idx, raw):
    # Pure-JAX f32 mirror of the PyTorch module for numerical validation.
    emb = jnp.take(raw["emb"], x_idx, axis=0)                    # (B, T, E)
    B, T, _ = emb.shape
    H = HIDDEN
    h = jnp.zeros((B, H), jnp.float32)
    c = jnp.zeros((B, H), jnp.float32)
    for t in range(T):
        g = (emb[:, t, :] @ raw["w_ih"].T + raw["b_ih"]
             + h @ raw["w_hh"].T + raw["b_hh"])
        i_g = jax.nn.sigmoid(g[:, 0:H])
        f_g = jax.nn.sigmoid(g[:, H:2 * H])
        g_g = jnp.tanh(g[:, 2 * H:3 * H])
        o_g = jax.nn.sigmoid(g[:, 3 * H:4 * H])
        c = f_g * c + i_g * g_g
        h = o_g * jnp.tanh(c)
    return h @ raw["w_lin"].T + raw["b_lin"]


if __name__ == "__main__":
    key = jax.random.PRNGKey(0)
    raw, packed = init_params(key)

    # Same token indices as the reference script's `x` tensor: (B=3, T=8).
    x_idx = jnp.array(
        [[1, 2, 12, 34, 56, 78, 90, 80],
         [12, 45, 99, 67, 6, 23, 77, 82],
         [3, 24, 6, 99, 12, 56, 21, 22]], dtype=jnp.int32)
    lengths = jnp.array([8, 8, 8], dtype=jnp.int32)

    out = lstm_fixed_len_forward(x_idx, lengths, packed)
    out = jax.block_until_ready(out)
    assert out.shape == (3, NCLASS)

    # Validate against the pure-JAX reference.  The bf16 recurrent matmul and
    # tanh-based sigmoid change numerics slightly; tolerance covers that.
    ref = lstm_fixed_len_reference(x_idx, raw)
    max_err = float(jnp.max(jnp.abs(out - ref)))
    assert max_err < 1e-1, max_err
    print("KERNEL_OK")
</pallas_src>

<mosaic_0001>
module attributes {stable_mosaic.version = 11 : i64} {
  func.func @lstm_fixed_len_kernel(%arg0: memref<64x1xi32, #tpu.memory_space<vmem>>, %arg1: memref<128x128xf32, #tpu.memory_space<vmem>>, %arg2: memref<128x128xbf16, #tpu.memory_space<vmem>>, %arg3: memref<128x128xf32, #tpu.memory_space<vmem>>, %arg4: memref<1x128xf32, #tpu.memory_space<vmem>>, %arg5: memref<8x128xf32, #tpu.memory_space<vmem>>, %arg6: memref<64x128xf32, #tpu.memory_space<vmem>>) attributes {dimension_semantics = [], scalar_prefetch = 0 : i64, scratch_operands = 1 : i64, tpu.core_type = #tpu.core_type<tc>} {
    %c0 = arith.constant 0 : index
    %c0_0 = arith.constant 0 : index
    %0 = vector.load %arg0[%c0, %c0_0] : memref<64x1xi32, #tpu.memory_space<vmem>>, vector<64x1xi32>
    %1 = tpu.iota {dimensions = array<i32: 1>} : vector<64x128xi32>
    %2 = vector.broadcast %0 : vector<64x1xi32> to vector<64x128xi32>
    %3 = arith.cmpi eq, %1, %2 : vector<64x128xi32>
    %4 = arith.extui %3 : vector<64x128xi1> to vector<64x128xi32>
    %5 = arith.sitofp %4 : vector<64x128xi32> to vector<64x128xf32>
    %c0_1 = arith.constant 0 : index
    %c0_2 = arith.constant 0 : index
    %6 = vector.load %arg1[%c0_1, %c0_2] : memref<128x128xf32, #tpu.memory_space<vmem>>, vector<128x128xf32>
    %cst = arith.constant dense<0.000000e+00> : vector<64x128xf32>
    %7 = tpu.matmul %5, %6, %cst {dimension_numbers = #tpu.dot_dimension_numbers<[1], [0], [0], [1], [0, 0, 1, 1], [], []>} : vector<64x128xf32>, vector<128x128xf32>, vector<64x128xf32> -> vector<64x128xf32>
    %c0_3 = arith.constant 0 : index
    %c0_4 = arith.constant 0 : index
    %8 = vector.load %arg6[%c0_3, %c0_4] : memref<64x128xf32, #tpu.memory_space<vmem>>, vector<64x128xf32>
    tpu.vector_store %arg6[%c0_3, %c0_4], %7 {strides = array<i32>} : memref<64x128xf32, #tpu.memory_space<vmem>>, vector<64x128xf32>,
    %9 = tpu.iota {dimensions = array<i32: 1>} : vector<8x128xi32>
    %c64_i32 = arith.constant 64 : i32
    %10 = vector.broadcast %c64_i32 : i32 to vector<8x128xi32>
    %11 = arith.cmpi sge, %9, %10 : vector<8x128xi32>
    %c96_i32 = arith.constant 96 : i32
    %12 = vector.broadcast %c96_i32 : i32 to vector<8x128xi32>
    %13 = arith.cmpi slt, %9, %12 : vector<8x128xi32>
    %14 = arith.andi %11, %13 : vector<8x128xi1>
    %cst_5 = arith.constant 1.000000e+00 : f32
    %cst_6 = arith.constant 5.000000e-01 : f32
    %15 = vector.broadcast %cst_5 : f32 to vector<8x128xf32>
    %16 = vector.broadcast %cst_6 : f32 to vector<8x128xf32>
    %17 = arith.select %14, %15, %16 : vector<8x128xi1>, vector<8x128xf32>
    %cst_7 = arith.constant 0.000000e+00 : f32
    %cst_8 = arith.constant 5.000000e-01 : f32
    %18 = vector.broadcast %cst_7 : f32 to vector<8x128xf32>
    %19 = vector.broadcast %cst_8 : f32 to vector<8x128xf32>
    %20 = arith.select %14, %18, %19 : vector<8x128xi1>, vector<8x128xf32>
    %cst_9 = arith.constant 0.000000e+00 : f32
    %21 = vector.broadcast %cst_9 : f32 to vector<8x128xf32>
    %cst_10 = arith.constant 0.000000e+00 : f32
    %22 = vector.broadcast %cst_10 : f32 to vector<8x128xf32>
    %c0_11 = arith.constant 0 : index
    %c0_12 = arith.constant 0 : index
    %23 = vector.load %arg6[%c0_11, %c0_12] : memref<64x128xf32, #tpu.memory_space<vmem>>, vector<8x128xf32>
    %24 = arith.truncf %21 : vector<8x128xf32> to vector<8x128xbf16>
    %c0_13 = arith.constant 0 : index
    %c0_14 = arith.constant 0 : index
    %25 = vector.load %arg2[%c0_13, %c0_14] : memref<128x128xbf16, #tpu.memory_space<vmem>>, vector<128x128xbf16>
    %cst_15 = arith.constant dense<0.000000e+00> : vector<8x128xf32>
    %26 = tpu.matmul %24, %25, %cst_15 {dimension_numbers = #tpu.dot_dimension_numbers<[1], [0], [0], [1], [0, 0, 1, 1], [], []>} : vector<8x128xbf16>, vector<128x128xbf16>, vector<8x128xf32> -> vector<8x128xf32>
    %27 = arith.addf %23, %26 : vector<8x128xf32>
    %28 = arith.mulf %27, %17 : vector<8x128xf32>
    %29 = math.tanh %28 : vector<8x128xf32>
    %30 = arith.mulf %29, %17 : vector<8x128xf32>
    %31 = arith.addf %30, %20 : vector<8x128xf32>
    %c96_i32_16 = arith.constant 96 : i32
    %32 = tpu.dynamic_rotate %31 by %c96_i32_16 dim 1 : vector<8x128xf32>, i32 -> vector<8x128xf32>
    %c64_i32_17 = arith.constant 64 : i32
    %33 = tpu.dynamic_rotate %31 by %c64_i32_17 dim 1 : vector<8x128xf32>, i32 -> vector<8x128xf32>
    %34 = arith.mulf %32, %22 : vector<8x128xf32>
    %35 = arith.mulf %31, %33 : vector<8x128xf32>
    %36 = arith.addf %34, %35 : vector<8x128xf32>
    %c32_i32 = arith.constant 32 : i32
    %37 = tpu.dynamic_rotate %31 by %c32_i32 dim 1 : vector<8x128xf32>, i32 -> vector<8x128xf32>
    %38 = math.tanh %36 : vector<8x128xf32>
    %39 = arith.mulf %37, %38 : vector<8x128xf32>
    %c8 = arith.constant 8 : index
    %c0_18 = arith.constant 0 : index
    %40 = vector.load %arg6[%c8, %c0_18] : memref<64x128xf32, #tpu.memory_space<vmem>>, vector<8x128xf32>
    %41 = arith.truncf %39 : vector<8x128xf32> to vector<8x128xbf16>
    %c0_19 = arith.constant 0 : index
    %c0_20 = arith.constant 0 : index
    %42 = vector.load %arg2[%c0_19, %c0_20] : memref<128x128xbf16, #tpu.memory_space<vmem>>, vector<128x128xbf16>
    %cst_21 = arith.constant dense<0.000000e+00> : vector<8x128xf32>
    %43 = tpu.matmul %41, %42, %cst_21 {dimension_numbers = #tpu.dot_dimension_numbers<[1], [0], [0], [1], [0, 0, 1, 1], [], []>} : vector<8x128xbf16>, vector<128x128xbf16>, vector<8x128xf32> -> vector<8x128xf32>
    %44 = arith.addf %40, %43 : vector<8x128xf32>
    %45 = arith.mulf %44, %17 : vector<8x128xf32>
    %46 = math.tanh %45 : vector<8x128xf32>
    %47 = arith.mulf %46, %17 : vector<8x128xf32>
    %48 = arith.addf %47, %20 : vector<8x128xf32>
    %c96_i32_22 = arith.constant 96 : i32
    %49 = tpu.dynamic_rotate %48 by %c96_i32_22 dim 1 : vector<8x128xf32>, i32 -> vector<8x128xf32>
    %c64_i32_23 = arith.constant 64 : i32
    %50 = tpu.dynamic_rotate %48 by %c64_i32_23 dim 1 : vector<8x128xf32>, i32 -> vector<8x128xf32>
    %51 = arith.mulf %49, %36 : vector<8x128xf32>
    %52 = arith.mulf %48, %50 : vector<8x128xf32>
    %53 = arith.addf %51, %52 : vector<8x128xf32>
    %c32_i32_24 = arith.constant 32 : i32
    %54 = tpu.dynamic_rotate %48 by %c32_i32_24 dim 1 : vector<8x128xf32>, i32 -> vector<8x128xf32>
    %55 = math.tanh %53 : vector<8x128xf32>
    %56 = arith.mulf %54, %55 : vector<8x128xf32>
    %c16 = arith.constant 16 : index
    %c0_25 = arith.constant 0 : index
    %57 = vector.load %arg6[%c16, %c0_25] : memref<64x128xf32, #tpu.memory_space<vmem>>, vector<8x128xf32>
    %58 = arith.truncf %56 : vector<8x128xf32> to vector<8x128xbf16>
    %c0_26 = arith.constant 0 : index
    %c0_27 = arith.constant 0 : index
    %59 = vector.load %arg2[%c0_26, %c0_27] : memref<128x128xbf16, #tpu.memory_space<vmem>>, vector<128x128xbf16>
    %cst_28 = arith.constant dense<0.000000e+00> : vector<8x128xf32>
    %60 = tpu.matmul %58, %59, %cst_28 {dimension_numbers = #tpu.dot_dimension_numbers<[1], [0], [0], [1], [0, 0, 1, 1], [], []>} : vector<8x128xbf16>, vector<128x128xbf16>, vector<8x128xf32> -> vector<8x128xf32>
    %61 = arith.addf %57, %60 : vector<8x128xf32>
    %62 = arith.mulf %61, %17 : vector<8x128xf32>
    %63 = math.tanh %62 : vector<8x128xf32>
    %64 = arith.mulf %63, %17 : vector<8x128xf32>
    %65 = arith.addf %64, %20 : vector<8x128xf32>
    %c96_i32_29 = arith.constant 96 : i32
    %66 = tpu.dynamic_rotate %65 by %c96_i32_29 dim 1 : vector<8x128xf32>, i32 -> vector<8x128xf32>
    %c64_i32_30 = arith.constant 64 : i32
    %67 = tpu.dynamic_rotate %65 by %c64_i32_30 dim 1 : vector<8x128xf32>, i32 -> vector<8x128xf32>
    %68 = arith.mulf %66, %53 : vector<8x128xf32>
    %69 = arith.mulf %65, %67 : vector<8x128xf32>
    %70 = arith.addf %68, %69 : vector<8x128xf32>
    %c32_i32_31 = arith.constant 32 : i32
    %71 = tpu.dynamic_rotate %65 by %c32_i32_31 dim 1 : vector<8x128xf32>, i32 -> vector<8x128xf32>
    %72 = math.tanh %70 : vector<8x128xf32>
    %73 = arith.mulf %71, %72 : vector<8x128xf32>
    %c24 = arith.constant 24 : index
    %c0_32 = arith.constant 0 : index
    %74 = vector.load %arg6[%c24, %c0_32] : memref<64x128xf32, #tpu.memory_space<vmem>>, vector<8x128xf32>
    %75 = arith.truncf %73 : vector<8x128xf32> to vector<8x128xbf16>
    %c0_33 = arith.constant 0 : index
    %c0_34 = arith.constant 0 : index
    %76 = vector.load %arg2[%c0_33, %c0_34] : memref<128x128xbf16, #tpu.memory_space<vmem>>, vector<128x128xbf16>
    %cst_35 = arith.constant dense<0.000000e+00> : vector<8x128xf32>
    %77 = tpu.matmul %75, %76, %cst_35 {dimension_numbers = #tpu.dot_dimension_numbers<[1], [0], [0], [1], [0, 0, 1, 1], [], []>} : vector<8x128xbf16>, vector<128x128xbf16>, vector<8x128xf32> -> vector<8x128xf32>
    %78 = arith.addf %74, %77 : vector<8x128xf32>
    %79 = arith.mulf %78, %17 : vector<8x128xf32>
    %80 = math.tanh %79 : vector<8x128xf32>
    %81 = arith.mulf %80, %17 : vector<8x128xf32>
    %82 = arith.addf %81, %20 : vector<8x128xf32>
    %c96_i32_36 = arith.constant 96 : i32
    %83 = tpu.dynamic_rotate %82 by %c96_i32_36 dim 1 : vector<8x128xf32>, i32 -> vector<8x128xf32>
    %c64_i32_37 = arith.constant 64 : i32
    %84 = tpu.dynamic_rotate %82 by %c64_i32_37 dim 1 : vector<8x128xf32>, i32 -> vector<8x128xf32>
    %85 = arith.mulf %83, %70 : vector<8x128xf32>
    %86 = arith.mulf %82, %84 : vector<8x128xf32>
    %87 = arith.addf %85, %86 : vector<8x128xf32>
    %c32_i32_38 = arith.constant 32 : i32
    %88 = tpu.dynamic_rotate %82 by %c32_i32_38 dim 1 : vector<8x128xf32>, i32 -> vector<8x128xf32>
    %89 = math.tanh %87 : vector<8x128xf32>
    %90 = arith.mulf %88, %89 : vector<8x128xf32>
    %c32 = arith.constant 32 : index
    %c0_39 = arith.constant 0 : index
    %91 = vector.load %arg6[%c32, %c0_39] : memref<64x128xf32, #tpu.memory_space<vmem>>, vector<8x128xf32>
    %92 = arith.truncf %90 : vector<8x128xf32> to vector<8x128xbf16>
    %c0_40 = arith.constant 0 : index
    %c0_41 = arith.constant 0 : index
    %93 = vector.load %arg2[%c0_40, %c0_41] : memref<128x128xbf16, #tpu.memory_space<vmem>>, vector<128x128xbf16>
    %cst_42 = arith.constant dense<0.000000e+00> : vector<8x128xf32>
    %94 = tpu.matmul %92, %93, %cst_42 {dimension_numbers = #tpu.dot_dimension_numbers<[1], [0], [0], [1], [0, 0, 1, 1], [], []>} : vector<8x128xbf16>, vector<128x128xbf16>, vector<8x128xf32> -> vector<8x128xf32>
    %95 = arith.addf %91, %94 : vector<8x128xf32>
    %96 = arith.mulf %95, %17 : vector<8x128xf32>
    %97 = math.tanh %96 : vector<8x128xf32>
    %98 = arith.mulf %97, %17 : vector<8x128xf32>
    %99 = arith.addf %98, %20 : vector<8x128xf32>
    %c96_i32_43 = arith.constant 96 : i32
    %100 = tpu.dynamic_rotate %99 by %c96_i32_43 dim 1 : vector<8x128xf32>, i32 -> vector<8x128xf32>
    %c64_i32_44 = arith.constant 64 : i32
    %101 = tpu.dynamic_rotate %99 by %c64_i32_44 dim 1 : vector<8x128xf32>, i32 -> vector<8x128xf32>
    %102 = arith.mulf %100, %87 : vector<8x128xf32>
    %103 = arith.mulf %99, %101 : vector<8x128xf32>
    %104 = arith.addf %102, %103 : vector<8x128xf32>
    %c32_i32_45 = arith.constant 32 : i32
    %105 = tpu.dynamic_rotate %99 by %c32_i32_45 dim 1 : vector<8x128xf32>, i32 -> vector<8x128xf32>
    %106 = math.tanh %104 : vector<8x128xf32>
    %107 = arith.mulf %105, %106 : vector<8x128xf32>
    %c40 = arith.constant 40 : index
    %c0_46 = arith.constant 0 : index
    %108 = vector.load %arg6[%c40, %c0_46] : memref<64x128xf32, #tpu.memory_space<vmem>>, vector<8x128xf32>
    %109 = arith.truncf %107 : vector<8x128xf32> to vector<8x128xbf16>
    %c0_47 = arith.constant 0 : index
    %c0_48 = arith.constant 0 : index
    %110 = vector.load %arg2[%c0_47, %c0_48] : memref<128x128xbf16, #tpu.memory_space<vmem>>, vector<128x128xbf16>
    %cst_49 = arith.constant dense<0.000000e+00> : vector<8x128xf32>
    %111 = tpu.matmul %109, %110, %cst_49 {dimension_numbers = #tpu.dot_dimension_numbers<[1], [0], [0], [1], [0, 0, 1, 1], [], []>} : vector<8x128xbf16>, vector<128x128xbf16>, vector<8x128xf32> -> vector<8x128xf32>
    %112 = arith.addf %108, %111 : vector<8x128xf32>
    %113 = arith.mulf %112, %17 : vector<8x128xf32>
    %114 = math.tanh %113 : vector<8x128xf32>
    %115 = arith.mulf %114, %17 : vector<8x128xf32>
    %116 = arith.addf %115, %20 : vector<8x128xf32>
    %c96_i32_50 = arith.constant 96 : i32
    %117 = tpu.dynamic_rotate %116 by %c96_i32_50 dim 1 : vector<8x128xf32>, i32 -> vector<8x128xf32>
    %c64_i32_51 = arith.constant 64 : i32
    %118 = tpu.dynamic_rotate %116 by %c64_i32_51 dim 1 : vector<8x128xf32>, i32 -> vector<8x128xf32>
    %119 = arith.mulf %117, %104 : vector<8x128xf32>
    %120 = arith.mulf %116, %118 : vector<8x128xf32>
    %121 = arith.addf %119, %120 : vector<8x128xf32>
    %c32_i32_52 = arith.constant 32 : i32
    %122 = tpu.dynamic_rotate %116 by %c32_i32_52 dim 1 : vector<8x128xf32>, i32 -> vector<8x128xf32>
    %123 = math.tanh %121 : vector<8x128xf32>
    %124 = arith.mulf %122, %123 : vector<8x128xf32>
    %c48 = arith.constant 48 : index
    %c0_53 = arith.constant 0 : index
    %125 = vector.load %arg6[%c48, %c0_53] : memref<64x128xf32, #tpu.memory_space<vmem>>, vector<8x128xf32>
    %126 = arith.truncf %124 : vector<8x128xf32> to vector<8x128xbf16>
    %c0_54 = arith.constant 0 : index
    %c0_55 = arith.constant 0 : index
    %127 = vector.load %arg2[%c0_54, %c0_55] : memref<128x128xbf16, #tpu.memory_space<vmem>>, vector<128x128xbf16>
    %cst_56 = arith.constant dense<0.000000e+00> : vector<8x128xf32>
    %128 = tpu.matmul %126, %127, %cst_56 {dimension_numbers = #tpu.dot_dimension_numbers<[1], [0], [0], [1], [0, 0, 1, 1], [], []>} : vector<8x128xbf16>, vector<128x128xbf16>, vector<8x128xf32> -> vector<8x128xf32>
    %129 = arith.addf %125, %128 : vector<8x128xf32>
    %130 = arith.mulf %129, %17 : vector<8x128xf32>
    %131 = math.tanh %130 : vector<8x128xf32>
    %132 = arith.mulf %131, %17 : vector<8x128xf32>
    %133 = arith.addf %132, %20 : vector<8x128xf32>
    %c96_i32_57 = arith.constant 96 : i32
    %134 = tpu.dynamic_rotate %133 by %c96_i32_57 dim 1 : vector<8x128xf32>, i32 -> vector<8x128xf32>
    %c64_i32_58 = arith.constant 64 : i32
    %135 = tpu.dynamic_rotate %133 by %c64_i32_58 dim 1 : vector<8x128xf32>, i32 -> vector<8x128xf32>
    %136 = arith.mulf %134, %121 : vector<8x128xf32>
    %137 = arith.mulf %133, %135 : vector<8x128xf32>
    %138 = arith.addf %136, %137 : vector<8x128xf32>
    %c32_i32_59 = arith.constant 32 : i32
    %139 = tpu.dynamic_rotate %133 by %c32_i32_59 dim 1 : vector<8x128xf32>, i32 -> vector<8x128xf32>
    %140 = math.tanh %138 : vector<8x128xf32>
    %141 = arith.mulf %139, %140 : vector<8x128xf32>
    %c56 = arith.constant 56 : index
    %c0_60 = arith.constant 0 : index
    %142 = vector.load %arg6[%c56, %c0_60] : memref<64x128xf32, #tpu.memory_space<vmem>>, vector<8x128xf32>
    %143 = arith.truncf %141 : vector<8x128xf32> to vector<8x128xbf16>
    %c0_61 = arith.constant 0 : index
    %c0_62 = arith.constant 0 : index
    %144 = vector.load %arg2[%c0_61, %c0_62] : memref<128x128xbf16, #tpu.memory_space<vmem>>, vector<128x128xbf16>
    %cst_63 = arith.constant dense<0.000000e+00> : vector<8x128xf32>
    %145 = tpu.matmul %143, %144, %cst_63 {dimension_numbers = #tpu.dot_dimension_numbers<[1], [0], [0], [1], [0, 0, 1, 1], [], []>} : vector<8x128xbf16>, vector<128x128xbf16>, vector<8x128xf32> -> vector<8x128xf32>
    %146 = arith.addf %142, %145 : vector<8x128xf32>
    %147 = arith.mulf %146, %17 : vector<8x128xf32>
    %148 = math.tanh %147 : vector<8x128xf32>
    %149 = arith.mulf %148, %17 : vector<8x128xf32>
    %150 = arith.addf %149, %20 : vector<8x128xf32>
    %c96_i32_64 = arith.constant 96 : i32
    %151 = tpu.dynamic_rotate %150 by %c96_i32_64 dim 1 : vector<8x128xf32>, i32 -> vector<8x128xf32>
    %c64_i32_65 = arith.constant 64 : i32
    %152 = tpu.dynamic_rotate %150 by %c64_i32_65 dim 1 : vector<8x128xf32>, i32 -> vector<8x128xf32>
    %153 = arith.mulf %151, %138 : vector<8x128xf32>
    %154 = arith.mulf %150, %152 : vector<8x128xf32>
    %155 = arith.addf %153, %154 : vector<8x128xf32>
    %c32_i32_66 = arith.constant 32 : i32
    %156 = tpu.dynamic_rotate %150 by %c32_i32_66 dim 1 : vector<8x128xf32>, i32 -> vector<8x128xf32>
    %157 = math.tanh %155 : vector<8x128xf32>
    %158 = arith.mulf %156, %157 : vector<8x128xf32>
    %c0_67 = arith.constant 0 : index
    %c0_68 = arith.constant 0 : index
    %159 = vector.load %arg3[%c0_67, %c0_68] : memref<128x128xf32, #tpu.memory_space<vmem>>, vector<128x128xf32>
    %cst_69 = arith.constant dense<0.000000e+00> : vector<8x128xf32>
    %160 = tpu.matmul %158, %159, %cst_69 {dimension_numbers = #tpu.dot_dimension_numbers<[1], [0], [0], [1], [0, 0, 1, 1], [], []>} : vector<8x128xf32>, vector<128x128xf32>, vector<8x128xf32> -> vector<8x128xf32>
    %c0_70 = arith.constant 0 : index
    %c0_71 = arith.constant 0 : index
    %161 = vector.load %arg4[%c0_70, %c0_71] : memref<1x128xf32, #tpu.memory_space<vmem>>, vector<1x128xf32>
    %162 = vector.broadcast %161 : vector<1x128xf32> to vector<8x128xf32>
    %163 = arith.addf %160, %162 : vector<8x128xf32>
    %c0_72 = arith.constant 0 : index
    %c0_73 = arith.constant 0 : index
    %164 = vector.load %arg5[%c0_72, %c0_73] : memref<8x128xf32, #tpu.memory_space<vmem>>, vector<8x128xf32>
    tpu.vector_store %arg5[%c0_72, %c0_73], %163 {strides = array<i32>} : memref<8x128xf32, #tpu.memory_space<vmem>>, vector<8x128xf32>,
    return
  }
}

</mosaic_0001>

<bundles_post_ra>
// kernel: lstm_fixed_len_forward.1
= control target key start
LH: loop header
LB: loop body
LE: loop exit
PB: predicated region body
PF: predicated region fallthrough
CT: control target
= control target key end

     0   :  { %10 = vsyncpa [#allocation4], 0  ;;  %s1784_s0 = inlined_call_operand.vmem [shape: s32[64,1], index: 0, kind: input, shape index: {}]   ;;  %s1785_s1 = inlined_call_operand.hbm [shape: f32[128,128], index: 1, kind: input, shape index: {}]   ;;  %s1786_s2 = inlined_call_operand.vmem [shape: bf16[128,128], index: 2, kind: input, shape index: {}]   ;;  %s1787_s3 = inlined_call_operand.hbm [shape: f32[128,128], index: 3, kind: input, shape index: {}]   ;;  %s1788_s4 = inlined_call_operand.vmem [shape: f32[1,128], index: 4, kind: input, shape index: {}]   ;;  %s1789_s5 = inlined_call_operand.vmem [shape: f32[8,128], index: 5, kind: output, shape index: {}]  }
   0x1   :  { %11 = vsyncpa [#allocation6], 0  ;;  %s1404_s18 = smov [#allocation3]   ;;  %s1356_s22 = scalar_lea.hbm %s1785_s1, 2048 }
   0x2   :  { %s19_s19 = sshll.u32 %s1404_s18, 4  ;;  %p1357_p0 = scmp.ne.s32.totalorder %s1785_s1, %s1356_s22  ;;  %s20_s19 = int_to_ptr.vmem [resolvable:$true] %s19_s19 }
   0x3   :  { %p1360_p1 = scmp.lt.u32.totalorder %s1356_s22, %s1785_s1 }
   0x5   :  { %p1362_p2 = pnand %p1360_p1, %p1357_p0 }
   0x7   :  { %1365 = shalt.err (!%p1362_p2)
}
   0x8   :  { %s1366_s27 = scalar_lea.vmem %s20_s19, 2048  ;;  %p1371_p4 = scmp.lt.s32.totalorder %s20_s19, %s20_s19 }
   0x9   :  { %p1367_p3 = scmp.ne.s32.totalorder %s20_s19, %s1366_s27  ;;  %p1372_p5 = scmp.lt.s32.totalorder %s1366_s27, %s1366_s27 }
   0xb   :  { %p1373_p6 = por %p1372_p5, %p1371_p4 }
   0xd   :  { %p1374_p7 = pnand %p1373_p6, %p1367_p3 }
   0xf   :  { %1377 = shalt.err (!%p1374_p7)
}
  0x10   :  { %s1405_s28 = smov 128   ;;  %s1406_s29 = smov 8  }
  0x11   :  { %25 = dma.hbm_to_vmem [thread:$0]  %s1785_s1, 2048, %s20_s19, [#allocation4], %s1405_s28, %s1405_s28, %s1406_s29  }
  0x12   :  { %s1407_s7 = smov [#allocation5]   ;;  %s1378_s11 = scalar_lea.hbm %s1787_s3, 2048 }
  0x13   :  { %s33_s8 = sshll.u32 %s1407_s7, 4  ;;  %p1379_p8 = scmp.ne.s32.totalorder %s1787_s3, %s1378_s11  ;;  %s34_s8 = int_to_ptr.vmem [resolvable:$true] %s33_s8 }
  0x14   :  { %p1382_p9 = scmp.lt.u32.totalorder %s1378_s11, %s1787_s3 }
  0x16   :  { %p1384_p10 = pnand %p1382_p9, %p1379_p8 }
  0x18   :  { %1387 = shalt.err (!%p1384_p10)
}
  0x19   :  { %s1388_s16 = scalar_lea.vmem %s34_s8, 2048  ;;  %p1393_p12 = scmp.lt.s32.totalorder %s34_s8, %s34_s8 }
  0x1a   :  { %p1389_p11 = scmp.ne.s32.totalorder %s34_s8, %s1388_s16  ;;  %p1394_p13 = scmp.lt.s32.totalorder %s1388_s16, %s1388_s16 }
  0x1c   :  { %p1395_p0 = por %p1394_p13, %p1393_p12 }
  0x1e   :  { %p1396_p1 = pnand %p1395_p0, %p1389_p11 }
  0x20   :  { %1399 = shalt.err (!%p1396_p1)
}
  0x21   :  { %39 = dma.hbm_to_vmem [thread:$0]  %s1787_s3, 2048, %s34_s8, [#allocation6], %s1405_s28, %s1405_s28, %s1406_s29  }
  0x22   :  { %1400 = dma.done.wait [#allocation4], 2048  }
  0x23   :  { %1401 = vsyncadd [#allocation4], 4294965248 }
  0x24   :  { %1402 = dma.done.wait [#allocation6], 2048  }
  0x25   :  { %1403 = vsyncadd [#allocation6], 4294965248  ;;  %v1408_v0 = vmov 0   ;;  %v1409_v1 = vmov 0.0   ;;  %v49_v2 = vld [vmem:[%s1784_s0] sm:$0xff]  ;;  %v50_v3 = vld [vmem:[%s1784_s0 + $0x8] sm:$0xff]  ;;  %v57_v37 = vlaneseq }
  0x26   :  { %1314 = vset.pattern.permute.xlu0 %v1408_v0  ;;  %1050 = vmatprep.subr.bf16.mxu1 %v1409_v1  ;;  %v1483_v4 = vld [vmem:[%s1786_s2] sm:$0xff]   ;;  %v108_v6 = vld [vmem:[#allocation3 + $0x8] sm:$0xff]  ;;  %v109_v9 = vld [vmem:[#allocation3 + $0x10] sm:$0xff]  ;;  %vm1410_vm0 = vmmov 0   ;;  %v1411_v40 = vmov 1.0   ;;  %v1412_v50 = vmov 0.5  }
  0x27   :  { %1315 = vset.pattern.permute.xlu1 %v1408_v0  ;;  %60 = vperm.xlu0 %1314, %v49_v2   ;;  %v107_v5 = vld [vmem:[#allocation3] sm:$0xff]  ;;  %v1489_v8 = vld [vmem:[%s1786_s2 + $0x8] sm:$0xff]   ;;  %v110_v10 = vld [vmem:[#allocation3 + $0x18] sm:$0xff]  ;;  %v1561_v38 = vand.u32 127, %v57_v37  ;;  %s1413_s15 = smov 64   ;;  %s1414_s16 = smov 96  }
  0x28   :  { %1051 = vmatpush3.bf16.msra.mxu1 %v1483_v4  ;;  %v1245_v7 = vpack.c.bf16 %v108_v6, %v107_v5  ;;  %1066 = vmatprep.mubr.msk.bf16.mxu1 %vm1410_vm0, %v1409_v1  ;;  %v1249_v11 = vpack.c.bf16 %v110_v10, %v109_v9  ;;  %v111_v12 = vld [vmem:[#allocation3 + $0x20] sm:$0xff]  ;;  %v112_v13 = vld [vmem:[#allocation3 + $0x28] sm:$0xff]  ;;  %v1498_v14 = vld [vmem:[%s1786_s2 + $0x10] sm:$0xff]   ;;  %s1415_s23 = smov 32  }
  0x29   :  { %1052 = vmatprep.subr.bf16.mxu1 %v1409_v1  ;;  %v1253_v15 = vpack.c.bf16 %v112_v13, %v111_v12  ;;  %v113_v16 = vld [vmem:[#allocation3 + $0x30] sm:$0xff]  ;;  %v114_v17 = vld [vmem:[#allocation3 + $0x38] sm:$0xff]  ;;  %v115_v20 = vld [vmem:[#allocation3 + $0x40] sm:$0xff]  ;;  %vm236_vm4 = vcmp.ge.s32.totalorder %v1561_v38, 64  ;;  %vm237_vm5 = vcmp.lt.s32.totalorder %v1561_v38, 96 }
  0x2a   :  { %1246 = vmatprep.subr.bf16.mxu0 %v1245_v7  ;;  %v1505_v18 = vld [vmem:[%s1786_s2 + $0x18] sm:$0xff]   ;;  %v1257_v19 = vpack.c.bf16 %v114_v17, %v113_v16  ;;  %v116_v21 = vld [vmem:[#allocation3 + $0x48] sm:$0xff]  ;;  %v1512_v22 = vld [vmem:[%s1786_s2 + $0x20] sm:$0xff]  }
  0x2b   :  { %63 = vperm.xlu0 %1314, %v50_v3   ;;  %1248 = vmatpush3.bf16.msra.mxu0 %v1245_v7  ;;  %v1261_v23 = vpack.c.bf16 %v116_v21, %v115_v20  ;;  %v117_v24 = vld [vmem:[#allocation3 + $0x50] sm:$0xff]  ;;  %v118_v25 = vld [vmem:[#allocation3 + $0x58] sm:$0xff]  ;;  %v1519_v26 = vld [vmem:[%s1786_s2 + $0x28] sm:$0xff]  }
  0x2c   :  { %1053 = vmatpush3.bf16.msra.mxu1 %v1489_v8  ;;  %1250 = vmatprep.subr.bf16.mxu0 %v1249_v11  ;;  %v1265_v27 = vpack.c.bf16 %v118_v25, %v117_v24  ;;  %v119_v28 = vld [vmem:[#allocation3 + $0x60] sm:$0xff]  ;;  %v120_v29 = vld [vmem:[#allocation3 + $0x68] sm:$0xff]  ;;  %v1526_v30 = vld [vmem:[%s1786_s2 + $0x30] sm:$0xff]  }
  0x2d   :  { %1054 = vmatprep.subr.bf16.mxu1 %v1409_v1  ;;  %v1269_v31 = vpack.c.bf16 %v120_v29, %v119_v28  ;;  %v121_v32 = vld [vmem:[#allocation3 + $0x70] sm:$0xff]  ;;  %v122_v33 = vld [vmem:[#allocation3 + $0x78] sm:$0xff]  ;;  %vm238_vm6 = vmand %vm236_vm4, %vm237_vm5 }
  0x2e   :  { %v1533_v34 = vld [vmem:[%s1786_s2 + $0x38] sm:$0xff]   ;;  %v1273_v35 = vpack.c.bf16 %v122_v33, %v121_v32  ;;  %v51_v36 = vld [vmem:[%s1784_s0 + $0x10] sm:$0xff]  ;;  %v1592_v51 = vsel %vm238_vm6, 1.0, %v1412_v50  ;;  %v1597_v56 = vsel %vm238_vm6, 0.0, %v1412_v50  ;;  %v54_v59 = vld [vmem:[%s1784_s0 + $0x28] sm:$0xff] }
  0x2f   :  { %1252 = vmatpush3.bf16.msra.mxu0 %v1249_v11  ;;  %66 = vperm.xlu1 %1315, %v51_v36   ;;  %v52_v42 = vld [vmem:[%s1784_s0 + $0x18] sm:$0xff]  ;;  %v53_v60 = vld [vmem:[%s1784_s0 + $0x20] sm:$0xff]  ;;  %v55_v62 = vld [vmem:[%s1784_s0 + $0x30] sm:$0xff] }
  0x30   :  { %1055 = vmatpush3.bf16.msra.mxu1 %v1498_v14  ;;  %1254 = vmatprep.subr.bf16.mxu0 %v1253_v15  ;;  %v56_v61 = vld [vmem:[%s1784_s0 + $0x38] sm:$0xff] }
  0x31   :  { %1056 = vmatprep.subr.bf16.mxu1 %v1409_v1 }
  0x33   :  { %1256 = vmatpush3.bf16.msra.mxu0 %v1253_v15  ;;  %69 = vperm.xlu1 %1315, %v52_v42  }
  0x34   :  { %1057 = vmatpush3.bf16.msra.mxu1 %v1505_v18  ;;  %1258 = vmatprep.subr.bf16.mxu0 %v1257_v19 }
  0x35   :  { %1058 = vmatprep.subr.bf16.mxu1 %v1409_v1 }
  0x37   :  { %1260 = vmatpush3.bf16.msra.mxu0 %v1257_v19 }
  0x38   :  { %1059 = vmatpush3.bf16.msra.mxu1 %v1512_v22  ;;  %1262 = vmatprep.subr.bf16.mxu0 %v1261_v23 }
  0x39   :  { %1060 = vmatprep.subr.bf16.mxu1 %v1409_v1 }
  0x3b   :  { %1264 = vmatpush3.bf16.msra.mxu0 %v1261_v23 }
  0x3c   :  { %1061 = vmatpush3.bf16.msra.mxu1 %v1519_v26  ;;  %1266 = vmatprep.subr.bf16.mxu0 %v1265_v27 }
  0x3d   :  { %1062 = vmatprep.subr.bf16.mxu1 %v1409_v1 }
  0x3f   :  { %1268 = vmatpush3.bf16.msra.mxu0 %v1265_v27 }
  0x40   :  { %1063 = vmatpush3.bf16.msra.mxu1 %v1526_v30  ;;  %1270 = vmatprep.subr.bf16.mxu0 %v1269_v31 }
  0x41   :  { %1064 = vmatprep.subr.bf16.mxu1 %v1409_v1 }
  0x43   :  { %1272 = vmatpush3.bf16.msra.mxu0 %v1269_v31 }
  0x44   :  { %1065 = vmatpush3.bf16.msra.mxu1 %v1533_v34  ;;  %1274 = vmatprep.subr.bf16.mxu0 %v1273_v35 }
  0x45   :  { %1090 = vmatprep.subr.bf16.mxu1 %v1409_v1 }
  0x47   :  { %1276 = vmatpush3.bf16.msra.mxu0 %v1273_v35  ;;  %1067 = vmatmul.mubr.bf16.vlgmr.msra.gmra.mrb[0].mxu1 %v1408_v0 }
  0x48   :  { %1070 = vmatprep.subr.bf16.mxu0 %v1409_v1  ;;  %1091 = vmatpush3.bf16.msra.mxu1 %v1483_v4 }
  0x49   :  { %1092 = vmatprep.subr.bf16.mxu1 %v1409_v1  ;;  %1106 = vmatprep.mubr.msk.bf16.mxu1 %vm1410_vm0, %v1409_v1 }
  0x4c   :  { %1093 = vmatpush3.bf16.msra.mxu1 %v1489_v8 }
  0x4d   :  { %1094 = vmatprep.subr.bf16.mxu1 %v1409_v1 }
  0x50   :  { %1095 = vmatpush3.bf16.msra.mxu1 %v1498_v14 }
  0x51   :  { %1096 = vmatprep.subr.bf16.mxu1 %v1409_v1 }
  0x54   :  { %1097 = vmatpush3.bf16.msra.mxu1 %v1505_v18 }
  0x55   :  { %1098 = vmatprep.subr.bf16.mxu1 %v1409_v1 }
  0x58   :  { %1099 = vmatpush3.bf16.msra.mxu1 %v1512_v22 }
  0x59   :  { %1100 = vmatprep.subr.bf16.mxu1 %v1409_v1 }
  0x5c   :  { %1101 = vmatpush3.bf16.msra.mxu1 %v1519_v26 }
  0x5d   :  { %1102 = vmatprep.subr.bf16.mxu1 %v1409_v1 }
  0x60   :  { %1103 = vmatpush3.bf16.msra.mxu1 %v1526_v30 }
  0x61   :  { %1104 = vmatprep.subr.bf16.mxu1 %v1409_v1 }
  0x64   :  { %1105 = vmatpush3.bf16.msra.mxu1 %v1533_v34 }
  0x65   :  { %1130 = vmatprep.subr.bf16.mxu1 %v1409_v1 }
  0xa6   :  { %v61_v39 = vpop.permute.xlu0 %60 }
  0xa7   :  { %vm83_vm1 = vcmp.eq.s32.totalorder %v1561_v38, %v61_v39 }
  0xa8   :  { %1038 = vmatprep.mubr.msk.f32.mxu0 %vm83_vm1, %v1411_v40 }
  0xaa   :  { %v64_v41 = vpop.permute.xlu0 %63 }
  0xab   :  { %vm84_vm2 = vcmp.eq.s32.totalorder %v1561_v38, %v64_v41 }
  0xac   :  { %1039 = vmatmul.mubr.msk.f32.vlgmr.msra.gmra.mrb[0].mxu0 %vm84_vm2, %v1411_v40 }
  0xad   :  { %1071 = vmatpush3.bf16.msra.mxu0 %v1483_v4 }
  0xae   :  { %1072 = vmatprep.subr.bf16.mxu0 %v1409_v1  ;;  %v67_v47 = vpop.permute.xlu1 %66 }
  0xaf   :  { %vm85_vm3 = vcmp.eq.s32.totalorder %v1561_v38, %v67_v47 }
  0xb0   :  { %1041 = vmatprep.mubr.msk.f32.mxu0 %vm85_vm3, %v1411_v40 }
  0xb1   :  { %1073 = vmatpush3.bf16.msra.mxu0 %v1489_v8 }
  0xb2   :  { %1074 = vmatprep.subr.bf16.mxu0 %v1409_v1  ;;  %v70_v53 = vpop.permute.xlu1 %69 }
  0xb3   :  { %vm86_vm7 = vcmp.eq.s32.totalorder %v1561_v38, %v70_v53 }
  0xb4   :  { %1042 = vmatmul.mubr.msk.f32.gmra.mrb[2].mxu0 %vm86_vm7, %v1411_v40 }
  0xb5   :  { %1075 = vmatpush3.bf16.msra.mxu0 %v1498_v14 }
  0xb6   :  { %1076 = vmatprep.subr.bf16.mxu0 %v1409_v1 }
  0xb9   :  { %1077 = vmatpush3.bf16.msra.mxu0 %v1505_v18 }
  0xba   :  { %1078 = vmatprep.subr.bf16.mxu0 %v1409_v1 }
  0xbd   :  { %1079 = vmatpush3.bf16.msra.mxu0 %v1512_v22 }
  0xbe   :  { %1080 = vmatprep.subr.bf16.mxu0 %v1409_v1 }
  0xc1   :  { %1081 = vmatpush3.bf16.msra.mxu0 %v1519_v26 }
  0xc2   :  { %1082 = vmatprep.subr.bf16.mxu0 %v1409_v1 }
  0xc5   :  { %1083 = vmatpush3.bf16.msra.mxu0 %v1526_v30 }
  0xc6   :  { %1084 = vmatprep.subr.bf16.mxu0 %v1409_v1 }
  0xc9   :  { %1085 = vmatpush3.bf16.msra.mxu0 %v1533_v34 }
  0xca   :  { %1110 = vmatprep.subr.bf16.mxu0 %v1409_v1 }
 0x11a   :  { %v340_v43 = vpop.f32.mrb[0].mxu1 }
 0x11b   :  { %v1068_v44 = vpop.f32.mrb[1].mxu1 }
 0x11c   :  { %v343_v45 = vpop.f32.mrb[2].mxu1 }
 0x11d   :  { %v1069_v46 = vpop.f32.mrb[3].mxu1 }
 0x17f   :  { %v1590_v48 = vpop.f32.mrb[0].mxu0 }
 0x180   :  { %v189_v49 = vpop.f32.mrb[1].mxu0 }
 0x181   :  { %v346_v52 = vadd.f32 %v340_v43, %v189_v49 }
 0x183   :  { %v347_v54 = vmul.f32 %v346_v52, %v1592_v51 }
 0x185   :  { %1324 = vtanh.f32 %v347_v54 }
 0x187   :  { %v1644_v16 = vpop.f32.mrb[2].mxu0 }
 0x188   :  { %v199_v17 = vpop.f32.mrb[3].mxu0 }
 0x18f   :  { %v1325_v55 = vpop.eup %1324 }
 0x190   :  { %v349_v57 = vmul.f32 %v1325_v55, %v1592_v51 }
 0x192   :  { %v350_v58 = vadd.f32 %v349_v57, %v1597_v56 }
 0x194   :  { %353 = vrot.lane.b32.xlu1 %v350_v58, %s1413_s15  ;;  %351 = vrot.lane.b32.xlu0 %v350_v58, %s1414_s16 }
 0x198   :  { %75 = vperm.xlu1 %1315, %v54_v59   ;;  %72 = vperm.xlu0 %1314, %v53_v60  }
 0x19c   :  { %81 = vperm.xlu1 %1315, %v56_v61   ;;  %78 = vperm.xlu0 %1314, %v55_v62  }
 0x1a0   :  { %358 = vrot.lane.b32.xlu0 %v350_v58, %s1415_s23 }
 0x206   :  { %v354_v63 = vpop.permute.xlu1 %353  ;;  %v352_v0 = vpop.permute.xlu0 %351 }
 0x207   :  { %v356_v2 = vmul.f32 %v354_v63, %v350_v58  ;;  %v355_v3 = vmul.f32 0.0, %v352_v0 }
 0x209   :  { %v357_v5 = vadd.f32 %v356_v2, %v355_v3 }
 0x20b   :  { %1326 = vtanh.f32 %v357_v5 }
 0x215   :  { %v1327_v11 = vpop.eup %1326 }
 0x217   :  { %v76_v6 = vpop.permute.xlu1 %75  ;;  %v73_v7 = vpop.permute.xlu0 %72 }
 0x218   :  { %vm88_vm8 = vcmp.eq.s32.totalorder %v1561_v38, %v76_v6  ;;  %vm87_vm9 = vcmp.eq.s32.totalorder %v1561_v38, %v73_v7 }
 0x219   :  { %1044 = vmatprep.mubr.msk.f32.mxu0 %vm87_vm9, %v1411_v40 }
 0x21a   :  { %1045 = vmatmul.mubr.msk.f32.gmra.mrb[4].mxu0 %vm88_vm8, %v1411_v40 }
 0x21b   :  { %v82_v9 = vpop.permute.xlu1 %81  ;;  %v79_v10 = vpop.permute.xlu0 %78 }
 0x21c   :  { %vm90_vm10 = vcmp.eq.s32.totalorder %v1561_v38, %v82_v9  ;;  %vm89_vm11 = vcmp.eq.s32.totalorder %v1561_v38, %v79_v10 }
 0x21d   :  { %1047 = vmatprep.mubr.msk.f32.mxu0 %vm89_vm11, %v1411_v40 }
 0x21e   :  { %1048 = vmatmul.mubr.msk.f32.gmra.mrb[6].mxu0 %vm90_vm10, %v1411_v40 }
 0x21f   :  { %v359_v12 = vpop.permute.xlu0 %358  ;;  %1086 = vmatprep.mubr.msk.bf16.mxu0 %vm1410_vm0, %v1409_v1 }
 0x220   :  { %v361_v13 = vmul.f32 %v1327_v11, %v359_v12 }
 0x222   :  { %v363_v15 = vpack.c.bf16 %v361_v13, %v361_v13 }
 0x224   :  { %1087 = vmatmul.mubr.bf16.vlgmr.msra.gmra.mrb[8].mxu0 %v363_v15 }
 0x225   :  { %1111 = vmatpush3.bf16.msra.mxu0 %v1483_v4  ;;  %1126 = vmatprep.mubr.msk.bf16.mxu0 %vm1410_vm0, %v1409_v1 }
 0x226   :  { %1112 = vmatprep.subr.bf16.mxu0 %v1409_v1 }
 0x229   :  { %1113 = vmatpush3.bf16.msra.mxu0 %v1489_v8 }
 0x22a   :  { %1114 = vmatprep.subr.bf16.mxu0 %v1409_v1 }
 0x22d   :  { %1115 = vmatpush3.bf16.msra.mxu0 %v1498_v14 }
 0x22e   :  { %1116 = vmatprep.subr.bf16.mxu0 %v1409_v1 }
 0x231   :  { %1117 = vmatpush3.bf16.msra.mxu0 %v1505_v18 }
 0x232   :  { %1118 = vmatprep.subr.bf16.mxu0 %v1409_v1 }
 0x235   :  { %1119 = vmatpush3.bf16.msra.mxu0 %v1512_v22 }
 0x236   :  { %1120 = vmatprep.subr.bf16.mxu0 %v1409_v1 }
 0x239   :  { %1121 = vmatpush3.bf16.msra.mxu0 %v1519_v26 }
 0x23a   :  { %1122 = vmatprep.subr.bf16.mxu0 %v1409_v1 }
 0x23d   :  { %1123 = vmatpush3.bf16.msra.mxu0 %v1526_v30 }
 0x23e   :  { %1124 = vmatprep.subr.bf16.mxu0 %v1409_v1 }
 0x241   :  { %1125 = vmatpush3.bf16.msra.mxu0 %v1533_v34 }
 0x242   :  { %1150 = vmatprep.subr.bf16.mxu0 %v1409_v1 }
 0x2ed   :  { %v1646_v19 = vpop.f32.mrb[4].mxu0 }
 0x2ee   :  { %v1648_v20 = vpop.f32.mrb[5].mxu0 }
 0x2f1   :  { %v1650_v21 = vpop.f32.mrb[6].mxu0 }
 0x2f2   :  { %v1652_v23 = vpop.f32.mrb[7].mxu0 }
 0x2f7   :  { %v398_v24 = vpop.f32.mrb[8].mxu0 }
 0x2f8   :  { %v404_v25 = vadd.f32 %v1590_v48, %v398_v24  ;;  %v1088_v27 = vpop.f32.mrb[9].mxu0 }
 0x2f9   :  { %v401_v28 = vpop.f32.mrb[10].mxu0 }
 0x2fa   :  { %v405_v29 = vmul.f32 %v404_v25, %v1592_v51  ;;  %v1089_v31 = vpop.f32.mrb[11].mxu0 }
 0x2fc   :  { %1328 = vtanh.f32 %v405_v29 }
 0x306   :  { %v1329_v32 = vpop.eup %1328 }
 0x307   :  { %v407_v33 = vmul.f32 %v1329_v32, %v1592_v51 }
 0x309   :  { %v408_v35 = vadd.f32 %v407_v33, %v1597_v56 }
 0x30b   :  { %411 = vrot.lane.b32.xlu0 %v408_v35, %s1413_s15  ;;  %409 = vrot.lane.b32.xlu1 %v408_v35, %s1414_s16 }
 0x30f   :  { %416 = vrot.lane.b32.xlu1 %v408_v35, %s1415_s23 }
 0x37d   :  { %v412_v36 = vpop.permute.xlu0 %411  ;;  %v410_v37 = vpop.permute.xlu1 %409 }
 0x37e   :  { %v414_v38 = vmul.f32 %v412_v36, %v408_v35  ;;  %v413_v39 = vmul.f32 %v410_v37, %v357_v5 }
 0x380   :  { %v415_v40 = vadd.f32 %v414_v38, %v413_v39 }
 0x381   :  { %v417_v42 = vpop.permute.xlu1 %416 }
 0x382   :  { %1330 = vtanh.f32 %v415_v40 }
 0x38c   :  { %v1331_v41 = vpop.eup %1330 }
 0x38d   :  { %v419_v43 = vmul.f32 %v1331_v41, %v417_v42 }
 0x38f   :  { %v421_v44 = vpack.c.bf16 %v419_v43, %v419_v43 }
 0x391   :  { %1107 = vmatmul.mubr.bf16.vlgmr.msra.gmra.mrb[4].mxu1 %v421_v44 }
 0x392   :  { %1131 = vmatpush3.bf16.msra.mxu1 %v1483_v4  ;;  %1146 = vmatprep.mubr.msk.bf16.mxu1 %vm1410_vm0, %v1409_v1 }
 0x393   :  { %1132 = vmatprep.subr.bf16.mxu1 %v1409_v1 }
 0x396   :  { %1133 = vmatpush3.bf16.msra.mxu1 %v1489_v8 }
 0x397   :  { %1134 = vmatprep.subr.bf16.mxu1 %v1409_v1 }
 0x39a   :  { %1135 = vmatpush3.bf16.msra.mxu1 %v1498_v14 }
 0x39b   :  { %1136 = vmatprep.subr.bf16.mxu1 %v1409_v1 }
 0x39e   :  { %1137 = vmatpush3.bf16.msra.mxu1 %v1505_v18 }
 0x39f   :  { %1138 = vmatprep.subr.bf16.mxu1 %v1409_v1 }
 0x3a2   :  { %1139 = vmatpush3.bf16.msra.mxu1 %v1512_v22 }
 0x3a3   :  { %1140 = vmatprep.subr.bf16.mxu1 %v1409_v1 }
 0x3a6   :  { %1141 = vmatpush3.bf16.msra.mxu1 %v1519_v26 }
 0x3a7   :  { %1142 = vmatprep.subr.bf16.mxu1 %v1409_v1 }
 0x3aa   :  { %1143 = vmatpush3.bf16.msra.mxu1 %v1526_v30 }
 0x3ab   :  { %1144 = vmatprep.subr.bf16.mxu1 %v1409_v1 }
 0x3ae   :  { %1145 = vmatpush3.bf16.msra.mxu1 %v1533_v34 }
 0x3af   :  { %1170 = vmatprep.subr.bf16.mxu1 %v1409_v1 }
 0x464   :  { %v456_v45 = vpop.f32.mrb[4].mxu1 }
 0x465   :  { %v462_v46 = vadd.f32 %v456_v45, %v199_v17  ;;  %v1108_v47 = vpop.f32.mrb[5].mxu1 }
 0x466   :  { %v459_v48 = vpop.f32.mrb[6].mxu1 }
 0x467   :  { %v463_v49 = vmul.f32 %v462_v46, %v1592_v51  ;;  %v1109_v50 = vpop.f32.mrb[7].mxu1 }
 0x469   :  { %1332 = vtanh.f32 %v463_v49 }
 0x473   :  { %v1333_v52 = vpop.eup %1332 }
 0x474   :  { %v465_v53 = vmul.f32 %v1333_v52, %v1592_v51 }
 0x476   :  { %v466_v54 = vadd.f32 %v465_v53, %v1597_v56 }
 0x478   :  { %469 = vrot.lane.b32.xlu1 %v466_v54, %s1413_s15  ;;  %467 = vrot.lane.b32.xlu0 %v466_v54, %s1414_s16 }
 0x47c   :  { %474 = vrot.lane.b32.xlu0 %v466_v54, %s1415_s23 }
 0x4ea   :  { %v470_v55 = vpop.permute.xlu1 %469  ;;  %v468_v57 = vpop.permute.xlu0 %467 }
 0x4eb   :  { %v472_v58 = vmul.f32 %v470_v55, %v466_v54  ;;  %v471_v59 = vmul.f32 %v468_v57, %v415_v40 }
 0x4ed   :  { %v473_v60 = vadd.f32 %v472_v58, %v471_v59 }
 0x4ee   :  { %v475_v62 = vpop.permute.xlu0 %474 }
 0x4ef   :  { %1334 = vtanh.f32 %v473_v60 }
 0x4f9   :  { %v1335_v61 = vpop.eup %1334 }
 0x4fa   :  { %v477_v63 = vmul.f32 %v1335_v61, %v475_v62 }
 0x4fc   :  { %v479_v0 = vpack.c.bf16 %v477_v63, %v477_v63 }
 0x4fe   :  { %1127 = vmatmul.mubr.bf16.vlgmr.msra.gmra.mrb[12].mxu0 %v479_v0 }
 0x4ff   :  { %1151 = vmatpush3.bf16.msra.mxu0 %v1483_v4  ;;  %1166 = vmatprep.mubr.msk.bf16.mxu0 %vm1410_vm0, %v1409_v1 }
 0x500   :  { %1152 = vmatprep.subr.bf16.mxu0 %v1409_v1 }
 0x503   :  { %1153 = vmatpush3.bf16.msra.mxu0 %v1489_v8 }
 0x504   :  { %1154 = vmatprep.subr.bf16.mxu0 %v1409_v1 }
 0x507   :  { %1155 = vmatpush3.bf16.msra.mxu0 %v1498_v14 }
 0x508   :  { %1156 = vmatprep.subr.bf16.mxu0 %v1409_v1 }
 0x50b   :  { %1157 = vmatpush3.bf16.msra.mxu0 %v1505_v18 }
 0x50c   :  { %1158 = vmatprep.subr.bf16.mxu0 %v1409_v1 }
 0x50f   :  { %1159 = vmatpush3.bf16.msra.mxu0 %v1512_v22 }
 0x510   :  { %1160 = vmatprep.subr.bf16.mxu0 %v1409_v1 }
 0x513   :  { %1161 = vmatpush3.bf16.msra.mxu0 %v1519_v26 }
 0x514   :  { %1162 = vmatprep.subr.bf16.mxu0 %v1409_v1 }
 0x517   :  { %1163 = vmatpush3.bf16.msra.mxu0 %v1526_v30 }
 0x518   :  { %1164 = vmatprep.subr.bf16.mxu0 %v1409_v1 }
 0x51b   :  { %1165 = vmatpush3.bf16.msra.mxu0 %v1533_v34 }
 0x51c   :  { %1190 = vmatprep.subr.bf16.mxu0 %v1409_v1 }
 0x5d1   :  { %v514_v2 = vpop.f32.mrb[12].mxu0 }
 0x5d2   :  { %v520_v3 = vadd.f32 %v1644_v16, %v514_v2  ;;  %v1128_v5 = vpop.f32.mrb[13].mxu0 }
 0x5d3   :  { %v517_v6 = vpop.f32.mrb[14].mxu0 }
 0x5d4   :  { %v521_v7 = vmul.f32 %v520_v3, %v1592_v51  ;;  %v1129_v9 = vpop.f32.mrb[15].mxu0 }
 0x5d6   :  { %1336 = vtanh.f32 %v521_v7 }
 0x5e0   :  { %v1337_v10 = vpop.eup %1336 }
 0x5e1   :  { %v523_v11 = vmul.f32 %v1337_v10, %v1592_v51 }
 0x5e3   :  { %v524_v12 = vadd.f32 %v523_v11, %v1597_v56 }
 0x5e5   :  { %527 = vrot.lane.b32.xlu0 %v524_v12, %s1413_s15  ;;  %525 = vrot.lane.b32.xlu1 %v524_v12, %s1414_s16 }
 0x5e9   :  { %532 = vrot.lane.b32.xlu1 %v524_v12, %s1415_s23 }
 0x657   :  { %v528_v13 = vpop.permute.xlu0 %527  ;;  %v526_v15 = vpop.permute.xlu1 %525 }
 0x658   :  { %v530_v16 = vmul.f32 %v528_v13, %v524_v12  ;;  %v529_v17 = vmul.f32 %v526_v15, %v473_v60 }
 0x65a   :  { %v531_v24 = vadd.f32 %v530_v16, %v529_v17  ;;  %v768_v16 = vld [vmem:[#allocation5] sm:$0xff]  ;;  %v769_v17 = vld [vmem:[#allocation5 + $0x8] sm:$0xff] }
 0x65b   :  { %v533_v27 = vpop.permute.xlu1 %532 }
 0x65c   :  { %1338 = vtanh.f32 %v531_v24 }
 0x666   :  { %v1339_v25 = vpop.eup %1338 }
 0x667   :  { %v535_v28 = vmul.f32 %v1339_v25, %v533_v27  ;;  %v1416_v25 = vmov 0.0|0.0   ;;  %v1278_v27 = vpack.c.bf16 %v769_v17, %v768_v16 }
 0x669   :  { %v537_v29 = vpack.c.bf16 %v535_v28, %v535_v28  ;;  %v771_v28 = vld [vmem:[#allocation5 + $0x18] sm:$0xff] }
 0x66b   :  { %1147 = vmatmul.mubr.bf16.vlgmr.msra.gmra.mrb[8].mxu1 %v537_v29 }
 0x66c   :  { %1171 = vmatpush3.bf16.msra.mxu1 %v1483_v4  ;;  %1186 = vmatprep.mubr.msk.bf16.mxu1 %vm1410_vm0, %v1409_v1 }
 0x66d   :  { %1172 = vmatprep.subr.bf16.mxu1 %v1409_v1 }
 0x670   :  { %1173 = vmatpush3.bf16.msra.mxu1 %v1489_v8 }
 0x671   :  { %1174 = vmatprep.subr.bf16.mxu1 %v1409_v1 }
 0x674   :  { %1175 = vmatpush3.bf16.msra.mxu1 %v1498_v14 }
 0x675   :  { %1176 = vmatprep.subr.bf16.mxu1 %v1409_v1 }
 0x678   :  { %1177 = vmatpush3.bf16.msra.mxu1 %v1505_v18 }
 0x679   :  { %1178 = vmatprep.subr.bf16.mxu1 %v1409_v1 }
 0x67c   :  { %1179 = vmatpush3.bf16.msra.mxu1 %v1512_v22 }
 0x67d   :  { %1180 = vmatprep.subr.bf16.mxu1 %v1409_v1 }
 0x680   :  { %1181 = vmatpush3.bf16.msra.mxu1 %v1519_v26 }
 0x681   :  { %1182 = vmatprep.subr.bf16.mxu1 %v1409_v1 }
 0x684   :  { %1183 = vmatpush3.bf16.msra.mxu1 %v1526_v30 }
 0x685   :  { %1184 = vmatprep.subr.bf16.mxu1 %v1409_v1 }
 0x688   :  { %1185 = vmatpush3.bf16.msra.mxu1 %v1533_v34 }
 0x689   :  { %1277 = vmatprep.subr.bf16.mxu1 %v1416_v25 }
 0x73e   :  { %v572_v31 = vpop.f32.mrb[8].mxu1 }
 0x73f   :  { %v578_v32 = vadd.f32 %v572_v31, %v1648_v20  ;;  %v1148_v33 = vpop.f32.mrb[9].mxu1  ;;  %v772_v31 = vld [vmem:[#allocation5 + $0x20] sm:$0xff] }
 0x740   :  { %v575_v35 = vpop.f32.mrb[10].mxu1 }
 0x741   :  { %v579_v36 = vmul.f32 %v578_v32, %v1592_v51  ;;  %v1149_v37 = vpop.f32.mrb[11].mxu1  ;;  %v773_v32 = vld [vmem:[#allocation5 + $0x28] sm:$0xff]  ;;  %v774_v35 = vld [vmem:[#allocation5 + $0x30] sm:$0xff] }
 0x742   :  { %v1284_v33 = vpack.c.bf16 %v773_v32, %v772_v31 }
 0x743   :  { %1340 = vtanh.f32 %v579_v36  ;;  %v775_v36 = vld [vmem:[#allocation5 + $0x38] sm:$0xff] }
 0x744   :  { %v1287_v37 = vpack.c.bf16 %v775_v36, %v774_v35 }
 0x74d   :  { %v1341_v38 = vpop.eup %1340 }
 0x74e   :  { %v581_v39 = vmul.f32 %v1341_v38, %v1592_v51 }
 0x750   :  { %v582_v40 = vadd.f32 %v581_v39, %v1597_v56 }
 0x752   :  { %585 = vrot.lane.b32.xlu1 %v582_v40, %s1413_s15  ;;  %583 = vrot.lane.b32.xlu0 %v582_v40, %s1414_s16 }
 0x756   :  { %590 = vrot.lane.b32.xlu0 %v582_v40, %s1415_s23 }
 0x7c4   :  { %v586_v41 = vpop.permute.xlu1 %585  ;;  %v584_v42 = vpop.permute.xlu0 %583 }
 0x7c5   :  { %v588_v20 = vmul.f32 %v586_v41, %v582_v40  ;;  %v587_v43 = vmul.f32 %v584_v42, %v531_v24  ;;  %v770_v24 = vld [vmem:[#allocation5 + $0x10] sm:$0xff] }
 0x7c6   :  { %v1281_v29 = vpack.c.bf16 %v771_v28, %v770_v24 }
 0x7c7   :  { %v589_v44 = vadd.f32 %v588_v20, %v587_v43  ;;  %v776_v43 = vld [vmem:[#allocation5 + $0x40] sm:$0xff] }
 0x7c8   :  { %v591_v46 = vpop.permute.xlu0 %590 }
 0x7c9   :  { %1342 = vtanh.f32 %v589_v44 }
 0x7d3   :  { %v1343_v45 = vpop.eup %1342 }
 0x7d4   :  { %v593_v47 = vmul.f32 %v1343_v45, %v591_v46  ;;  %v778_v46 = vld [vmem:[#allocation5 + $0x50] sm:$0xff] }
 0x7d6   :  { %v595_v48 = vpack.c.bf16 %v593_v47, %v593_v47  ;;  %v779_v47 = vld [vmem:[#allocation5 + $0x58] sm:$0xff] }
 0x7d8   :  { %1167 = vmatmul.mubr.bf16.vlgmr.msra.gmra.mrb[16].mxu0 %v595_v48  ;;  %v1293_v48 = vpack.c.bf16 %v779_v47, %v778_v46 }
 0x7d9   :  { %1191 = vmatpush3.bf16.msra.mxu0 %v1483_v4  ;;  %1206 = vmatprep.mubr.msk.bf16.mxu0 %vm1410_vm0, %v1409_v1 }
 0x7da   :  { %1192 = vmatprep.subr.bf16.mxu0 %v1409_v1 }
 0x7dd   :  { %1193 = vmatpush3.bf16.msra.mxu0 %v1489_v8 }
 0x7de   :  { %1194 = vmatprep.subr.bf16.mxu0 %v1409_v1 }
 0x7e1   :  { %1195 = vmatpush3.bf16.msra.mxu0 %v1498_v14 }
 0x7e2   :  { %1196 = vmatprep.subr.bf16.mxu0 %v1409_v1 }
 0x7e5   :  { %1197 = vmatpush3.bf16.msra.mxu0 %v1505_v18 }
 0x7e6   :  { %1198 = vmatprep.subr.bf16.mxu0 %v1409_v1 }
 0x7e9   :  { %1199 = vmatpush3.bf16.msra.mxu0 %v1512_v22 }
 0x7ea   :  { %1200 = vmatprep.subr.bf16.mxu0 %v1409_v1 }
 0x7ed   :  { %1201 = vmatpush3.bf16.msra.mxu0 %v1519_v26 }
 0x7ee   :  { %1202 = vmatprep.subr.bf16.mxu0 %v1409_v1 }
 0x7f1   :  { %1203 = vmatpush3.bf16.msra.mxu0 %v1526_v30 }
 0x7f2   :  { %1204 = vmatprep.subr.bf16.mxu0 %v1409_v1 }
 0x7f5   :  { %1205 = vmatpush3.bf16.msra.mxu0 %v1533_v34 }
 0x8ab   :  { %v630_v4 = vpop.f32.mrb[16].mxu0 }
 0x8ac   :  { %v636_v8 = vadd.f32 %v1646_v19, %v630_v4  ;;  %v1168_v14 = vpop.f32.mrb[17].mxu0  ;;  %v780_v4 = vld [vmem:[#allocation5 + $0x60] sm:$0xff] }
 0x8ad   :  { %v633_v18 = vpop.f32.mrb[18].mxu0 }
 0x8ae   :  { %v637_v49 = vmul.f32 %v636_v8, %v1592_v51  ;;  %v1169_v22 = vpop.f32.mrb[19].mxu0  ;;  %v781_v8 = vld [vmem:[#allocation5 + $0x68] sm:$0xff] }
 0x8af   :  { %v782_v22 = vld [vmem:[#allocation5 + $0x70] sm:$0xff] }
 0x8b0   :  { %1344 = vtanh.f32 %v637_v49 }
 0x8ba   :  { %v1345_v50 = vpop.eup %1344 }
 0x8bb   :  { %v639_v26 = vmul.f32 %v1345_v50, %v1592_v51  ;;  %v783_v50 = vld [vmem:[#allocation5 + $0x78] sm:$0xff] }
 0x8bd   :  { %v640_v52 = vadd.f32 %v639_v26, %v1597_v56  ;;  %v1299_v26 = vpack.c.bf16 %v783_v50, %v782_v22 }
 0x8bf   :  { %643 = vrot.lane.b32.xlu0 %v640_v52, %s1413_s15  ;;  %641 = vrot.lane.b32.xlu1 %v640_v52, %s1414_s16 }
 0x8c3   :  { %648 = vrot.lane.b32.xlu1 %v640_v52, %s1415_s23 }
 0x931   :  { %v644_v30 = vpop.permute.xlu0 %643  ;;  %v642_v34 = vpop.permute.xlu1 %641 }
 0x932   :  { %v646_v19 = vmul.f32 %v644_v30, %v640_v52  ;;  %v645_v53 = vmul.f32 %v642_v34, %v589_v44  ;;  %v777_v44 = vld [vmem:[#allocation5 + $0x48] sm:$0xff] }
 0x933   :  { %v1290_v45 = vpack.c.bf16 %v777_v44, %v776_v43 }
 0x934   :  { %v647_v54 = vadd.f32 %v646_v19, %v645_v53 }
 0x935   :  { %v649_v57 = vpop.permute.xlu1 %648 }
 0x936   :  { %1346 = vtanh.f32 %v647_v54 }
 0x940   :  { %v1347_v55 = vpop.eup %1346 }
 0x941   :  { %v651_v58 = vmul.f32 %v1347_v55, %v649_v57  ;;  %v892_v55 = vld [vmem:[%s1788_s4] ss:$0 sm:$0xff] }
 0x943   :  { %v653_v59 = vpack.c.bf16 %v651_v58, %v651_v58 }
 0x945   :  { %1187 = vmatmul.mubr.bf16.vlgmr.msra.gmra.mrb[12].mxu1 %v653_v59 }
 0x946   :  { %1242 = vmatprep.mubr.msk.f32.mxu1 %vm1410_vm0, %v1409_v1  ;;  %1279 = vmatpush3.bf16.msra.mxu1 %v1278_v27 }
 0x947   :  { %1280 = vmatprep.subr.bf16.mxu1 %v1416_v25 }
 0x94a   :  { %1282 = vmatpush3.bf16.msra.mxu1 %v1281_v29 }
 0x94b   :  { %1283 = vmatprep.subr.bf16.mxu1 %v1416_v25 }
 0x94e   :  { %1285 = vmatpush3.bf16.msra.mxu1 %v1284_v33 }
 0x94f   :  { %1286 = vmatprep.subr.bf16.mxu1 %v1416_v25 }
 0x952   :  { %1288 = vmatpush3.bf16.msra.mxu1 %v1287_v37 }
 0x953   :  { %1289 = vmatprep.subr.bf16.mxu1 %v1416_v25 }
 0x956   :  { %1291 = vmatpush3.bf16.msra.mxu1 %v1290_v45 }
 0x957   :  { %1292 = vmatprep.subr.bf16.mxu1 %v1416_v25 }
 0x95a   :  { %1294 = vmatpush3.bf16.msra.mxu1 %v1293_v48 }
 0x95b   :  { %1295 = vmatprep.subr.bf16.mxu1 %v1416_v25 }
 0xa18   :  { %v688_v60 = vpop.f32.mrb[12].mxu1 }
 0xa19   :  { %v694_v61 = vadd.f32 %v688_v60, %v1652_v23  ;;  %v1188_v62 = vpop.f32.mrb[13].mxu1 }
 0xa1a   :  { %v691_v63 = vpop.f32.mrb[14].mxu1 }
 0xa1b   :  { %v695_v0 = vmul.f32 %v694_v61, %v1592_v51  ;;  %v1189_v2 = vpop.f32.mrb[15].mxu1 }
 0xa1d   :  { %1348 = vtanh.f32 %v695_v0 }
 0xa27   :  { %v1349_v3 = vpop.eup %1348 }
 0xa28   :  { %v697_v5 = vmul.f32 %v1349_v3, %v1592_v51 }
 0xa2a   :  { %v698_v6 = vadd.f32 %v697_v5, %v1597_v56 }
 0xa2c   :  { %701 = vrot.lane.b32.xlu1 %v698_v6, %s1413_s15  ;;  %699 = vrot.lane.b32.xlu0 %v698_v6, %s1414_s16 }
 0xa30   :  { %706 = vrot.lane.b32.xlu0 %v698_v6, %s1415_s23 }
 0xa9e   :  { %v702_v1 = vpop.permute.xlu1 %701  ;;  %v700_v7 = vpop.permute.xlu0 %699 }
 0xa9f   :  { %v704_v23 = vmul.f32 %v702_v1, %v698_v6  ;;  %v703_v9 = vmul.f32 %v700_v7, %v647_v54 }
 0xaa1   :  { %v1767_v10 = vadd.f32 %v704_v23, %v703_v9 }
 0xaa2   :  { %v707_v12 = vpop.permute.xlu0 %706 }
 0xaa3   :  { %1350 = vtanh.f32 %v1767_v10 }
 0xaad   :  { %v1351_v11 = vpop.eup %1350 }
 0xaae   :  { %v709_v13 = vmul.f32 %v1351_v11, %v707_v12 }
 0xab0   :  { %v711_v15 = vpack.c.bf16 %v709_v13, %v709_v13 }
 0xab2   :  { %1207 = vmatmul.mubr.bf16.vlgmr.msra.gmra.mrb[20].mxu0 %v711_v15 }
 0xb85   :  { %v746_v38 = vpop.f32.mrb[20].mxu0 }
 0xb86   :  { %v752_v39 = vadd.f32 %v1650_v21, %v746_v38  ;;  %v1208_v40 = vpop.f32.mrb[21].mxu0  ;;  %v1296_v21 = vpack.c.bf16 %v781_v8, %v780_v4 }
 0xb87   :  { %v749_v41 = vpop.f32.mrb[22].mxu0 }
 0xb88   :  { %v753_v42 = vmul.f32 %v752_v39, %v1592_v51  ;;  %v1209_v20 = vpop.f32.mrb[23].mxu0  ;;  %1297 = vmatpush3.bf16.msra.mxu1 %v1296_v21 }
 0xb89   :  { %1298 = vmatprep.subr.bf16.mxu1 %v1416_v25 }
 0xb8a   :  { %1352 = vtanh.f32 %v753_v42 }
 0xb8c   :  { %1300 = vmatpush3.bf16.msra.mxu1 %v1299_v26 }
 0xb94   :  { %v1353_v14 = vpop.eup %1352 }
 0xb95   :  { %v755_v18 = vmul.f32 %v1353_v14, %v1592_v51 }
 0xb97   :  { %v756_v49 = vadd.f32 %v755_v18, %v1597_v56 }
 0xb99   :  { %759 = vrot.lane.b32.xlu0 %v756_v49, %s1413_s15  ;;  %757 = vrot.lane.b32.xlu1 %v756_v49, %s1414_s16 }
 0xb9d   :  { %764 = vrot.lane.b32.xlu1 %v756_v49, %s1415_s23 }
 0xc0b   :  { %v760_v52 = vpop.permute.xlu0 %759  ;;  %v758_v30 = vpop.permute.xlu1 %757 }
 0xc0c   :  { %v762_v34 = vmul.f32 %v760_v52, %v756_v49  ;;  %v761_v19 = vmul.f32 %v758_v30, %v1767_v10 }
 0xc0e   :  { %v763_v51 = vadd.f32 %v762_v34, %v761_v19 }
 0xc0f   :  { %v765_v56 = vpop.permute.xlu1 %764 }
 0xc10   :  { %1354 = vtanh.f32 %v763_v51 }
 0xc1a   :  { %v1355_v53 = vpop.eup %1354 }
 0xc1b   :  { %v767_v54 = vmul.f32 %v1355_v53, %v765_v56 }
 0xc1d   :  { %1243 = vmatmul.mubr.f32.vlgmr.msra.gmra.mrb[16].mxu1 %v767_v54 }
 0xcf0   :  { %v857_v57 = vpop.f32.mrb[16].mxu1 }
 0xcf1   :  { %v858_v58 = vadd.f32 %v892_v55, %v857_v57  ;;  %v1244_v59 = vpop.f32.mrb[17].mxu1 }
 0xcf3   :  { %861 = vst [vmem:[%s1789_s5] sm:$0xff] %v858_v58 }
 0xcf4   :  { %866 = vsyncpa [#allocation4], 1 }
 0xcf5   :  { %867 = vsyncpa [#allocation6], 1 }

</bundles_post_ra>
